<compile_context>
chip_gen: v5e
topology: v5e:2x2
jax: 0.10.0
libtpu: 0.0.40
codegen_flags: <defaults>
</compile_context>

<pallas_src>
import functools

import jax
import jax.numpy as jnp
from jax.experimental import pallas as pl
from jax.experimental.pallas import tpu as pltpu


def _rbf_kernel(params_ref, x1_ref, x2t_ref, sq1n_ref, sq2n_ref, out_ref, *,
                matmul_dtype):
    """Compute one (TM, TN) tile of the RBF kernel matrix.

    params_ref : SMEM (2,) f32 -> [inv_ls2 = 1/ls^2, variance]
    x1_ref     : VMEM (TM, D)  f32  (rows of x1 for this i-tile)
    x2t_ref    : VMEM (D, TN)  f32  (columns of x2^T for this j-tile)
    sq1n_ref   : VMEM (TM, 1)  f32  (-0.5/ls^2 * ||x1_row||^2)
    sq2n_ref   : VMEM (1, TN)  f32  (-0.5/ls^2 * ||x2_row||^2, lane-major)
    out_ref    : VMEM (TM, TN) f32 or bf16
    """
    inv_ls2 = params_ref[0]
    variance = params_ref[1]

    a = x1_ref[...]
    b = x2t_ref[...]
    if matmul_dtype is not None:
        # Optional large-D fast path: bf16 inputs, f32 accumulation on the MXU.
        a = a.astype(matmul_dtype)
        b = b.astype(matmul_dtype)

    # Cross term on the MXU; x2 already transposed in the wrapper, so this is a
    # plain (TM, D) x (D, TN) contraction with no in-kernel XLU transpose.
    cross = jax.lax.dot_general(
        a, b,
        dimension_numbers=(((1,), (0,)), ((), ())),
        preferred_element_type=jnp.float32)                      # (TM, TN)

    # arg = -0.5 * dist2 / ls^2, folded to one FMA + one add per element:
    #   arg = (1/ls^2)*cross - 0.5/ls^2*||a||^2 - 0.5/ls^2*||b||^2
    arg = inv_ls2 * cross + sq1n_ref[...] + sq2n_ref[...]
    # dist2 >= 0  <=>  arg <= 0 ; clamp guards against cancellation noise.
    arg = jnp.minimum(arg, 0.0)

    # exp kept in f32 for accuracy on all generations; store may cast to bf16.
    out_ref[...] = (variance * jnp.exp(arg)).astype(out_ref.dtype)


def _round_up(x, m):
    return ((x + m - 1) // m) * m


def _cdiv(a, b):
    return (a + b - 1) // b


def _pick_tile(n, max_tile, align):
    """Divisor-friendly tile <= max_tile; pad waste capped at align-1 elems."""
    n_tiles = _cdiv(n, max_tile)
    return min(_round_up(_cdiv(n, n_tiles), align), _round_up(max_tile, align))


def _vmem_footprint(tm, tn, d, out_itemsize):
    """Double-buffered VMEM bytes for one grid step (inputs f32)."""
    in_bytes = 4
    return 2 * ((tm * d + d * tn + tm + tn) * in_bytes + tm * tn * out_itemsize)


def rbf_kernel_advanced(x1, x2, raw_length_scale, raw_variance, *,
                        max_tile_m=1024, max_tile_n=1024,
                        out_dtype=jnp.float32, matmul_dtype=None,
                        vmem_budget_bytes=40 * 1024 * 1024):
    """JAX wrapper mirroring RBFKernelAdvanced.forward."""
    x1 = jnp.asarray(x1, jnp.float32)
    x2 = jnp.asarray(x2, jnp.float32)
    N, D = x1.shape
    M, D2 = x2.shape
    assert D == D2, "x1 and x2 must share the feature dimension"

    # --- parameter transform (matches torch.where(raw < 0, softplus(raw), raw))
    raw_ls = jnp.asarray(raw_length_scale, jnp.float32).reshape(-1)[0]
    raw_var = jnp.asarray(raw_variance, jnp.float32).reshape(-1)[0]
    length_scale = jnp.where(raw_ls < 0, jax.nn.softplus(raw_ls), raw_ls)
    variance = jnp.where(raw_var < 0, jax.nn.softplus(raw_var), raw_var)
    inv_ls2 = 1.0 / (length_scale * length_scale)
    params = jnp.stack([inv_ls2, variance]).astype(jnp.float32)   # (2,) SMEM

    out_itemsize = jnp.dtype(out_dtype).itemsize

    # --- tile selection: big, lane-dense, divisor-friendly, VMEM-budgeted.
    eff_m = _round_up(min(max_tile_m, _round_up(N, 8)), 8)
    eff_n = _round_up(min(max_tile_n, _round_up(M, 128)), 128)
    while True:
        TM = _pick_tile(N, eff_m, 8)
        TN = _pick_tile(M, eff_n, 128)
        if _vmem_footprint(TM, TN, D, out_itemsize) <= vmem_budget_bytes:
            break
        if eff_n > 128 and eff_n >= eff_m:
            eff_n = max(128, eff_n // 2)
        elif eff_m > 8:
            eff_m = max(8, eff_m // 2)
        else:
            break  # already at the minimum tile; rely on vmem_limit below

    N_pad = _round_up(N, TM)
    M_pad = _round_up(M, TN)

    # --- pad inputs so every tile is full (no masked partial stores).
    x1_p = jnp.pad(x1, ((0, N_pad - N), (0, 0))) if N_pad != N else x1
    x2_p = jnp.pad(x2, ((0, M_pad - M), (0, 0))) if M_pad != M else x2

    # --- hoist the transpose, squared norms, and -0.5/ls^2 scaling into XLA.
    x2t_p = x2_p.T                                                  # (D, M_pad)
    neg_half_inv = -0.5 * inv_ls2
    sq1n = neg_half_inv * jnp.sum(x1_p * x1_p, axis=-1, keepdims=True)   # (N_pad, 1)
    sq2n = neg_half_inv * jnp.sum(x2_p * x2_p, axis=-1)[None, :]         # (1, M_pad)

    grid = (N_pad // TM, M_pad // TN)

    footprint = _vmem_footprint(TM, TN, D, out_itemsize)
    vmem_limit = int(min(max(footprint * 5 // 4 + (2 << 20), 16 << 20), 64 << 20))

    cost = pl.CostEstimate(
        flops=2 * N_pad * M_pad * D + 4 * N_pad * M_pad,
        transcendentals=N_pad * M_pad,
        bytes_accessed=(N_pad * D + D * M_pad + N_pad + M_pad) * 4
                       + N_pad * M_pad * out_itemsize,
    )

    kernel = functools.partial(_rbf_kernel, matmul_dtype=matmul_dtype)

    out_padded = pl.pallas_call(
        kernel,
        out_shape=jax.ShapeDtypeStruct((N_pad, M_pad), out_dtype),
        grid=grid,
        in_specs=[
            pl.BlockSpec(memory_space=pltpu.SMEM),                # params scalars
            pl.BlockSpec((TM, D), lambda i, j: (i, 0)),           # x1 row tile
            pl.BlockSpec((D, TN), lambda i, j: (0, j)),           # x2^T column tile
            pl.BlockSpec((TM, 1), lambda i, j: (i, 0)),           # scaled ||x1||^2
            pl.BlockSpec((1, TN), lambda i, j: (0, j)),           # scaled ||x2||^2
        ],
        out_specs=pl.BlockSpec((TM, TN), lambda i, j: (i, j)),
        compiler_params=pltpu.CompilerParams(
            dimension_semantics=("parallel", "parallel"),
            vmem_limit_bytes=vmem_limit),
        cost_estimate=cost,
    )(params, x1_p, x2t_p, sq1n, sq2n)

    if N_pad != N or M_pad != M:
        return out_padded[:N, :M]
    return out_padded


def _reference(x1, x2, raw_ls, raw_var):
    raw_ls = jnp.asarray(raw_ls, jnp.float32).reshape(-1)[0]
    raw_var = jnp.asarray(raw_var, jnp.float32).reshape(-1)[0]
    ls = jnp.where(raw_ls < 0, jax.nn.softplus(raw_ls), raw_ls)
    var = jnp.where(raw_var < 0, jax.nn.softplus(raw_var), raw_var)
    d2 = jnp.sum((x1[:, None, :] - x2[None, :, :]) ** 2, axis=-1)
    return var * jnp.exp(-0.5 * d2 / ls ** 2)


if __name__ == "__main__":
    # deterministic parameter init (matches module __init__ defaults)
    raw_length_scale = jnp.array([0.6931471824645996], dtype=jnp.float32)
    raw_variance = jnp.array([0.6931471824645996], dtype=jnp.float32)

    key = jax.random.PRNGKey(0)
    k1, k2, k3, k4 = jax.random.split(key, 4)

    # Small, deliberately non-tile-aligned shapes exercising the padding path.
    N, M, D = 100, 72, 32
    x1 = jax.random.normal(k1, (N, D), dtype=jnp.float32)
    x2 = jax.random.normal(k2, (M, D), dtype=jnp.float32)
    ref = _reference(x1, x2, raw_length_scale, raw_variance)

    # Default f32 path — matches the PyTorch reference to tight tolerance.
    out = rbf_kernel_advanced(x1, x2, raw_length_scale, raw_variance)
    out = jax.block_until_ready(out)
    assert out.shape == (N, M)
    assert jnp.allclose(out, ref, atol=1e-4, rtol=1e-4), "f32 mismatch vs reference"

    # Multi-tile path: small tile caps force a multi-block grid + divisor-friendly
    # tiles, exercising the new padding/tiling logic.
    N2, M2, D2 = 136, 200, 16
    x1b = jax.random.normal(k3, (N2, D2), dtype=jnp.float32)
    x2b = jax.random.normal(k4, (M2, D2), dtype=jnp.float32)
    refb = _reference(x1b, x2b, raw_length_scale, raw_variance)
    outb = rbf_kernel_advanced(x1b, x2b, raw_length_scale, raw_variance,
                               max_tile_m=64, max_tile_n=128)
    outb = jax.block_until_ready(outb)
    assert outb.shape == (N2, M2)
    assert jnp.allclose(outb, refb, atol=1e-4, rtol=1e-4), "tiled mismatch vs reference"

    # bf16-output fast path (halves HBM store traffic on the store-bound regime).
    out_bf16 = rbf_kernel_advanced(x1, x2, raw_length_scale, raw_variance,
                                   out_dtype=jnp.bfloat16)
    out_bf16 = jax.block_until_ready(out_bf16)
    assert out_bf16.dtype == jnp.bfloat16
    assert jnp.allclose(out_bf16.astype(jnp.float32), ref, atol=2e-2, rtol=2e-2), \
        "bf16 output mismatch vs reference"

    print("KERNEL_OK")
</pallas_src>

<mosaic_0001>
module attributes {stable_mosaic.version = 11 : i64} {
  func.func @_rbf_kernel(%arg0: i32, %arg1: i32, %arg2: memref<2xf32, #tpu.memory_space<smem>>, %arg3: memref<104x32xf32, #tpu.memory_space<vmem>>, %arg4: memref<32x128xf32, #tpu.memory_space<vmem>>, %arg5: memref<104x1xf32, #tpu.memory_space<vmem>>, %arg6: memref<1x128xf32, #tpu.memory_space<vmem>>, %arg7: memref<104x128xf32, #tpu.memory_space<vmem>>) attributes {dimension_semantics = [#tpu.dimension_semantics<parallel>, #tpu.dimension_semantics<parallel>], iteration_bounds = array<i64: 1, 1>, scalar_prefetch = 0 : i64, scratch_operands = 0 : i64, tpu.core_type = #tpu.core_type<tc>, window_params = [{transform_indices = @transform_0, window_bounds = array<i64: 2>}, {transform_indices = @transform_1, window_bounds = array<i64: 104, 32>}, {transform_indices = @transform_2, window_bounds = array<i64: 32, 128>}, {transform_indices = @transform_3, window_bounds = array<i64: 104, 1>}, {transform_indices = @transform_4, window_bounds = array<i64: 1, 128>}, {transform_indices = @transform_5, window_bounds = array<i64: 104, 128>}]} {
    %c0 = arith.constant 0 : index
    %0 = memref.load %arg2[%c0] : memref<2xf32, #tpu.memory_space<smem>>
    %c1 = arith.constant 1 : index
    %1 = memref.load %arg2[%c1] : memref<2xf32, #tpu.memory_space<smem>>
    %c0_0 = arith.constant 0 : index
    %c0_1 = arith.constant 0 : index
    %2 = vector.load %arg3[%c0_0, %c0_1] : memref<104x32xf32, #tpu.memory_space<vmem>>, vector<104x32xf32>
    %c0_2 = arith.constant 0 : index
    %c0_3 = arith.constant 0 : index
    %3 = vector.load %arg4[%c0_2, %c0_3] : memref<32x128xf32, #tpu.memory_space<vmem>>, vector<32x128xf32>
    %cst = arith.constant dense<0.000000e+00> : vector<104x128xf32>
    %4 = tpu.matmul %2, %3, %cst {dimension_numbers = #tpu.dot_dimension_numbers<[1], [0], [0], [1], [0, 0, 1, 1], [], []>} : vector<104x32xf32>, vector<32x128xf32>, vector<104x128xf32> -> vector<104x128xf32>
    %5 = vector.broadcast %0 : f32 to vector<104x128xf32>
    %6 = arith.mulf %5, %4 : vector<104x128xf32>
    %c0_4 = arith.constant 0 : index
    %c0_5 = arith.constant 0 : index
    %7 = vector.load %arg5[%c0_4, %c0_5] : memref<104x1xf32, #tpu.memory_space<vmem>>, vector<104x1xf32>
    %8 = vector.broadcast %7 : vector<104x1xf32> to vector<104x128xf32>
    %9 = arith.addf %6, %8 : vector<104x128xf32>
    %c0_6 = arith.constant 0 : index
    %c0_7 = arith.constant 0 : index
    %10 = vector.load %arg6[%c0_6, %c0_7] : memref<1x128xf32, #tpu.memory_space<vmem>>, vector<1x128xf32>
    %11 = vector.broadcast %10 : vector<1x128xf32> to vector<104x128xf32>
    %12 = arith.addf %9, %11 : vector<104x128xf32>
    %cst_8 = arith.constant 0.000000e+00 : f32
    %13 = vector.broadcast %cst_8 : f32 to vector<104x128xf32>
    %14 = arith.minimumf %12, %13 : vector<104x128xf32>
    %15 = math.exp %14 : vector<104x128xf32>
    %16 = vector.broadcast %1 : f32 to vector<104x128xf32>
    %17 = arith.mulf %16, %15 : vector<104x128xf32>
    %c0_9 = arith.constant 0 : index
    %c0_10 = arith.constant 0 : index
    %18 = vector.load %arg7[%c0_9, %c0_10] : memref<104x128xf32, #tpu.memory_space<vmem>>, vector<104x128xf32>
    tpu.vector_store %arg7[%c0_9, %c0_10], %17 {strides = array<i32>} : memref<104x128xf32, #tpu.memory_space<vmem>>, vector<104x128xf32>,
    return
  }
  func.func @transform_0(%arg0: i32, %arg1: i32) -> i32 {
    %c0_i32 = arith.constant 0 : i32
    %c0_i32_0 = arith.constant 0 : i32
    return %c0_i32 : i32
  }
  func.func @transform_1(%arg0: i32, %arg1: i32) -> (i32, i32) {
    %c0_i32 = arith.constant 0 : i32
    %c0_i32_0 = arith.constant 0 : i32
    return %arg0, %c0_i32 : i32, i32
  }
  func.func @transform_2(%arg0: i32, %arg1: i32) -> (i32, i32) {
    %c0_i32 = arith.constant 0 : i32
    %c0_i32_0 = arith.constant 0 : i32
    return %c0_i32, %arg1 : i32, i32
  }
  func.func @transform_3(%arg0: i32, %arg1: i32) -> (i32, i32) {
    %c0_i32 = arith.constant 0 : i32
    %c0_i32_0 = arith.constant 0 : i32
    return %arg0, %c0_i32 : i32, i32
  }
  func.func @transform_4(%arg0: i32, %arg1: i32) -> (i32, i32) {
    %c0_i32 = arith.constant 0 : i32
    %c0_i32_0 = arith.constant 0 : i32
    return %c0_i32, %arg1 : i32, i32
  }
  func.func @transform_5(%arg0: i32, %arg1: i32) -> (i32, i32) {
    %c0_i32 = arith.constant 0 : i32
    return %arg0, %arg1 : i32, i32
  }
}

</mosaic_0001>

<bundles_post_ra>
// kernel: tpu_custom_call.1
= control target key start
LH: loop header
LB: loop body
LE: loop exit
PB: predicated region body
PF: predicated region fallthrough
CT: control target
= control target key end

     0   :  { %10 = vsyncpa [#allocation4], 0  ;;  %s661_s0 = inlined_call_operand.vmem [shape: f32[2], index: 0, kind: input, shape index: {}]   ;;  %s662_s1 = inlined_call_operand.vmem [shape: f32[104,32], index: 1, kind: input, shape index: {}]   ;;  %s663_s2 = inlined_call_operand.vmem [shape: f32[32,128], index: 2, kind: input, shape index: {}]   ;;  %s664_s3 = inlined_call_operand.vmem [shape: f32[104,1], index: 3, kind: input, shape index: {}]   ;;  %s665_s4 = inlined_call_operand.vmem [shape: f32[1,128], index: 4, kind: input, shape index: {}]   ;;  %s666_s5 = inlined_call_operand.hbm [shape: f32[104,128], index: 5, kind: output, shape index: {}]  }
   0x1   :  { %11 = vsyncpa [#allocation3], 0  ;;  %s17_s20 = sshll.u32 %s661_s0, 4  ;;  %s457_s21 = smov [#allocation2]   ;;  %s18_s20 = int_to_ptr.vmem [resolvable:$true] %s17_s20 }
   0x2   :  { %20 = dma.vmem_to_smem %s18_s20, 16, %s457_s21, [#allocation4]  }
   0x3   :  { %453 = dma.done.wait [#allocation4], 16  }
   0x4   :  { %454 = vsyncadd [#allocation4], 4294967280 }
   0x5   :  { %33 = sfence }
   0x6   :  { %v52_v0 = vld [vmem:[%s663_s2 + $0x18] sm:$0xff]  ;;  %v458_v1 = vmov 0   ;;  %v163_v2 = vld [vmem:[%s664_s3] sm:$0xff]  ;;  %v165_v3 = vld [vmem:[%s664_s3 + $0x10] sm:$0xff]  ;;  %vm53_vm0 = vcmask 261120   ;;  %s34_s0 = sld [smem:[#allocation2]] }
   0x7   :  { %387 = vset.pattern.permute.xlu0 %v458_v1  ;;  %105 = vmatpush.msra.mxu0 %v52_v0  ;;  %v51_v4 = vld [vmem:[%s663_s2 + $0x10] sm:$0xff]  ;;  %v50_v5 = vld [vmem:[%s663_s2 + $0x8] sm:$0xff]  ;;  %v49_v6 = vld [vmem:[%s663_s2] sm:$0xff]  ;;  %s356_s28 = sld [smem:[#allocation2 + $0x1]]  ;;  %s343_s7 = sshll.u32 %s666_s5, 4  ;;  %s344_s7 = int_to_ptr.hbm [resolvable:$true] %s343_s7 }
   0x8   :  { %370 = vmatpush.msra.mxu1 %v52_v0  ;;  %371 = vmatpush.msra.mxu2 %v52_v0  ;;  %v36_v7 = vld [vmem:[%s662_s1] sm:$0xff]  ;;  %v39_v8 = vld [vmem:[%s662_s1 + $0x18] sm:$0xff]  ;;  %v42_v9 = vld [vmem:[%s662_s1 + $0x30] sm:$0xff]  ;;  %s460_s8 = smov 128   ;;  %s461_s9 = smov 8  }
   0x9   :  { %372 = vmatpush.msra.mxu3 %v52_v0  ;;  %388 = vset.pattern.permute.xlu1 %v458_v1  ;;  %v46_v10 = vld [vmem:[%s662_s1 + $0x50] sm:$0xff]  ;;  %v164_v11 = vld [vmem:[%s664_s3 + $0x8] sm:$0xff]  ;;  %v166_v12 = vld [vmem:[%s664_s3 + $0x18] sm:$0xff] }
   0xa   :  { %178 = vperm.xlu0 %387, %v163_v2   ;;  %188 = vperm.xlu1 %388, %v165_v3   ;;  %v167_v13 = vld [vmem:[%s664_s3 + $0x20] sm:$0xff]  ;;  %v37_v14 = vld [vmem:[%s662_s1 + $0x8] sm:$0xff]  ;;  %v43_v16 = vld [vmem:[%s662_s1 + $0x38] sm:$0xff] }
   0xb   :  { %106 = vmatpush.msra.mxu0 %v51_v4  ;;  %373 = vmatpush.msra.mxu1 %v51_v4  ;;  %v40_v15 = vld [vmem:[%s662_s1 + $0x20] sm:$0xff]  ;;  %v47_v17 = vld [vmem:[%s662_s1 + $0x58] sm:$0xff]  ;;  %v169_v18 = vld [vmem:[%s664_s3 + $0x30] sm:$0xff] }
   0xc   :  { %374 = vmatpush.msra.mxu2 %v51_v4  ;;  %375 = vmatpush.msra.mxu3 %v51_v4  ;;  %v170_v19 = vld [vmem:[%s664_s3 + $0x38] sm:$0xff]  ;;  %v168_v20 = vld [vmem:[%s664_s3 + $0x28] sm:$0xff]  ;;  %v38_v21 = vld [vmem:[%s662_s1 + $0x10] sm:$0xff]  ;;  %v602_v37 = vstv %s34_s0 }
   0xd   :  { %107 = vmatpush.msra.mxu0 %v50_v5  ;;  %376 = vmatpush.msra.mxu1 %v50_v5  ;;  %v41_v22 = vld [vmem:[%s662_s1 + $0x28] sm:$0xff]  ;;  %v44_v23 = vld [vmem:[%s662_s1 + $0x40] sm:$0xff]  ;;  %v173_v26 = vld [vmem:[%s664_s3 + $0x50] sm:$0xff] }
   0xe   :  { %377 = vmatpush.msra.mxu2 %v50_v5  ;;  %378 = vmatpush.msra.mxu3 %v50_v5  ;;  %v48_v24 = vld [vmem:[%s662_s1 + $0x60] sm:$0xff]  ;;  %v172_v25 = vld [vmem:[%s664_s3 + $0x48] sm:$0xff]  ;;  %v174_v30 = vld [vmem:[%s664_s3 + $0x58] sm:$0xff] }
   0xf   :  { %108 = vmatpush.msra.mxu0 %v49_v6  ;;  %379 = vmatpush.msra.mxu1 %v49_v6  ;;  %v171_v27 = vld [vmem:[%s664_s3 + $0x40] sm:$0xff]  ;;  %v45_v28 = vld [vmem:[%s662_s1 + $0x48] sm:$0xff] }
  0x10   :  { %380 = vmatpush.msra.mxu2 %v49_v6  ;;  %381 = vmatpush.msra.mxu3 %v49_v6  ;;  %v175_v29 = vld [vmem:[%s664_s3 + $0x60] sm:$0xff] }
  0x11   :  { %357 = vmatmul.msk.f32.vlgmr.msra.gmra.mxu0 %vm53_vm0, %v36_v7  ;;  %360 = vmatmul.msk.f32.vlgmr.msra.gmra.mxu1 %vm53_vm0, %v39_v8  ;;  %v608_v42 = vld [vmem:[%s665_s4] ss:$0 sm:$0xff]  ;;  %v622_v8 = vstv %s356_s28  ;;  %s459_s4 = smov [#allocation5]  }
  0x12   :  { %363 = vmatmul.msk.f32.vlgmr.msra.gmra.mxu2 %vm53_vm0, %v42_v9  ;;  %367 = vmatmul.msk.f32.vlgmr.msra.gmra.mxu3 %vm53_vm0, %v46_v10  ;;  %s341_s29 = sshll.u32 %s459_s4, 4  ;;  %s342_s29 = int_to_ptr.vmem [resolvable:$true] %s341_s29 }
  0x13   :  { %183 = vperm.xlu0 %387, %v164_v11   ;;  %193 = vperm.xlu1 %388, %v166_v12  }
  0x14   :  { %389 = vset.pattern.permute.xlu2 %v458_v1 }
  0x15   :  { %198 = vperm.xlu2 %389, %v167_v13  }
  0x19   :  { %358 = vmatmul.msk.f32.gmra.mxu0 %vm53_vm0, %v37_v14  ;;  %361 = vmatmul.msk.f32.gmra.mxu1 %vm53_vm0, %v40_v15 }
  0x1a   :  { %364 = vmatmul.msk.f32.gmra.mxu2 %vm53_vm0, %v43_v16  ;;  %368 = vmatmul.msk.f32.gmra.mxu3 %vm53_vm0, %v47_v17 }
  0x1b   :  { %208 = vperm.xlu0 %387, %v169_v18   ;;  %213 = vperm.xlu1 %388, %v170_v19  }
  0x1d   :  { %203 = vperm.xlu2 %389, %v168_v20  }
  0x21   :  { %359 = vmatmul.msk.f32.gmra.mxu0 %vm53_vm0, %v38_v21  ;;  %362 = vmatmul.msk.f32.gmra.mxu1 %vm53_vm0, %v41_v22 }
  0x22   :  { %365 = vmatmul.msk.f32.gmra.mxu2 %vm53_vm0, %v44_v23  ;;  %369 = vmatmul.msk.f32.gmra.mxu3 %vm53_vm0, %v48_v24 }
  0x23   :  { %223 = vperm.xlu0 %387, %v172_v25   ;;  %228 = vperm.xlu1 %388, %v173_v26  }
  0x25   :  { %218 = vperm.xlu2 %389, %v171_v27  }
  0x2a   :  { %366 = vmatmul.msk.f32.gmra.mxu2 %vm53_vm0, %v45_v28 }
  0x2b   :  { %238 = vperm.xlu0 %387, %v175_v29  }
  0x2d   :  { %233 = vperm.xlu2 %389, %v174_v30  }
  0x6f   :  { %v199_v33 = vpop.permute.xlu2 %198 }
  0x77   :  { %v600_v36 = vpop.permute.xlu2 %203 }
  0x7c   :  { %v598_v31 = vpop.permute.xlu1 %188  ;;  %v179_v32 = vpop.permute.xlu0 %178 }
  0x7f   :  { %v613_v53 = vpop.permute.xlu2 %218 }
  0x85   :  { %v194_v34 = vpop.permute.xlu1 %193  ;;  %v184_v35 = vpop.permute.xlu0 %183 }
  0x87   :  { %v234_v24 = vpop.permute.xlu2 %233 }
  0x8d   :  { %v214_v38 = vpop.permute.xlu1 %213  ;;  %v209_v48 = vpop.permute.xlu0 %208 }
  0x8e   :  { %v110_v39 = vpop.f32.mrf.mxu0  ;;  %v119_v40 = vpop.f32.mrf.mxu1 }
  0x8f   :  { %v150_v41 = vmul.f32 %v602_v37, %v110_v39  ;;  %v153_v43 = vmul.f32 %v602_v37, %v119_v40 }
  0x91   :  { %v241_v44 = vadd.f32 %v179_v32, %v150_v41  ;;  %v244_v45 = vadd.f32 %v194_v34, %v153_v43 }
  0x93   :  { %v258_v46 = vadd.f32 %v608_v42, %v241_v44  ;;  %v261_v47 = vadd.f32 %v608_v42, %v244_v45 }
  0x95   :  { %v271_v49 = vmin.f32 %v258_v46, 0.0  ;;  %v274_v50 = vmin.f32 %v261_v47, 0.0  ;;  %v128_v51 = vpop.f32.mrf.mxu2  ;;  %v140_v52 = vpop.f32.mrf.mxu3 }
  0x96   :  { %v156_v54 = vmul.f32 %v602_v37, %v128_v51  ;;  %v160_v55 = vmul.f32 %v602_v37, %v140_v52  ;;  %v229_v56 = vpop.permute.xlu1 %228  ;;  %v113_v59 = vpop.f32.mrf.mxu0 }
  0x97   :  { %v284_v57 = vmul.f32 1.442695, %v271_v49  ;;  %v290_v58 = vmul.f32 1.442695, %v274_v50  ;;  %v122_v60 = vpop.f32.mrf.mxu1  ;;  %v151_v63 = vmul.f32 %v602_v37, %v113_v59  ;;  %v625_v13 = vpop.permute.xlu0 %223 }
  0x98   :  { %v247_v61 = vadd.f32 %v209_v48, %v156_v54  ;;  %v251_v62 = vadd.f32 %v229_v56, %v160_v55  ;;  %v154_v0 = vmul.f32 %v602_v37, %v122_v60 }
  0x99   :  { %391 = vpow2.f32 %v284_v57  ;;  %v242_v3 = vadd.f32 %v184_v35, %v151_v63 }
  0x9a   :  { %393 = vpow2.f32 %v290_v58  ;;  %v264_v1 = vadd.f32 %v608_v42, %v247_v61  ;;  %v268_v2 = vadd.f32 %v608_v42, %v251_v62  ;;  %v245_v4 = vadd.f32 %v199_v33, %v154_v0 }
  0x9b   :  { %v259_v7 = vadd.f32 %v608_v42, %v242_v3 }
  0x9c   :  { %v277_v5 = vmin.f32 %v264_v1, 0.0  ;;  %v281_v6 = vmin.f32 %v268_v2, 0.0  ;;  %v262_v9 = vadd.f32 %v608_v42, %v245_v4 }
  0x9d   :  { %v131_v10 = vpop.f32.mrf.mxu2  ;;  %v143_v11 = vpop.f32.mrf.mxu3  ;;  %v272_v15 = vmin.f32 %v259_v7, 0.0 }
  0x9e   :  { %v296_v12 = vmul.f32 1.442695, %v277_v5  ;;  %v304_v14 = vmul.f32 1.442695, %v281_v6  ;;  %v157_v16 = vmul.f32 %v602_v37, %v131_v10  ;;  %v275_v18 = vmin.f32 %v262_v9, 0.0  ;;  %v116_v20 = vpop.f32.mrf.mxu0 }
  0x9f   :  { %v392_v17 = vpop.eup %391  ;;  %v161_v19 = vmul.f32 %v602_v37, %v143_v11  ;;  %v125_v21 = vpop.f32.mrf.mxu1  ;;  %v286_v25 = vmul.f32 1.442695, %v272_v15  ;;  %v152_v32 = vmul.f32 %v602_v37, %v116_v20 }
  0xa0   :  { %v394_v22 = vpop.eup %393  ;;  %v311_v23 = vmul.f32 %v392_v17, %v622_v8  ;;  %395 = vpow2.f32 %v296_v12  ;;  %v248_v26 = vadd.f32 %v214_v38, %v157_v16  ;;  %v292_v28 = vmul.f32 1.442695, %v275_v18  ;;  %v239_v54 = vpop.permute.xlu0 %238 }
  0xa1   :  { %v314_v27 = vmul.f32 %v394_v22, %v622_v8  ;;  %397 = vpow2.f32 %v304_v14  ;;  %v252_v29 = vadd.f32 %v234_v24, %v161_v19  ;;  %v155_v33 = vmul.f32 %v602_v37, %v125_v21 }
  0xa2   :  { %324 = vst [vmem:[#allocation5] sm:$0xff] %v311_v23  ;;  %399 = vpow2.f32 %v286_v25  ;;  %v265_v30 = vadd.f32 %v608_v42, %v248_v26  ;;  %v243_v38 = vadd.f32 %v598_v31, %v152_v32 }
  0xa3   :  { %327 = vst [vmem:[#allocation5 + $0x18] sm:$0xff] %v314_v27  ;;  %401 = vpow2.f32 %v292_v28  ;;  %v269_v34 = vadd.f32 %v608_v42, %v252_v29  ;;  %v246_v39 = vadd.f32 %v600_v36, %v155_v33 }
  0xa4   :  { %v278_v35 = vmin.f32 %v265_v30, 0.0  ;;  %v260_v46 = vadd.f32 %v608_v42, %v243_v38 }
  0xa5   :  { %v282_v40 = vmin.f32 %v269_v34, 0.0  ;;  %v134_v41 = vpop.f32.mrf.mxu2  ;;  %v146_v43 = vpop.f32.mrf.mxu3  ;;  %v263_v47 = vadd.f32 %v608_v42, %v246_v39 }
  0xa6   :  { %v396_v44 = vpop.eup %395  ;;  %v298_v45 = vmul.f32 1.442695, %v278_v35  ;;  %v158_v48 = vmul.f32 %v602_v37, %v134_v41  ;;  %v162_v52 = vmul.f32 %v602_v37, %v146_v43  ;;  %v273_v55 = vmin.f32 %v260_v46, 0.0 }
  0xa7   :  { %v398_v49 = vpop.eup %397  ;;  %v317_v50 = vmul.f32 %v396_v44, %v622_v8  ;;  %v306_v51 = vmul.f32 1.442695, %v282_v40  ;;  %v276_v56 = vmin.f32 %v263_v47, 0.0 }
  0xa8   :  { %v400_v31 = vpop.eup %399  ;;  %v321_v36 = vmul.f32 %v398_v49, %v622_v8  ;;  %403 = vpow2.f32 %v298_v45  ;;  %v249_v59 = vadd.f32 %v613_v53, %v158_v48  ;;  %v253_v60 = vadd.f32 %v239_v54, %v162_v52 }
  0xa9   :  { %v402_v57 = vpop.eup %401  ;;  %330 = vst [vmem:[#allocation5 + $0x30] sm:$0xff] %v317_v50  ;;  %v312_v58 = vmul.f32 %v400_v31, %v622_v8  ;;  %405 = vpow2.f32 %v306_v51  ;;  %v288_v62 = vmul.f32 1.442695, %v273_v55  ;;  %v294_v63 = vmul.f32 1.442695, %v276_v56 }
  0xaa   :  { %334 = vst [vmem:[#allocation5 + $0x50] sm:$0xff] %v321_v36  ;;  %v315_v61 = vmul.f32 %v402_v57, %v622_v8  ;;  %v266_v0 = vadd.f32 %v608_v42, %v249_v59  ;;  %v270_v1 = vadd.f32 %v608_v42, %v253_v60 }
  0xab   :  { %325 = vst [vmem:[#allocation5 + $0x8] sm:$0xff] %v312_v58  ;;  %407 = vpow2.f32 %v288_v62 }
  0xac   :  { %328 = vst [vmem:[#allocation5 + $0x20] sm:$0xff] %v315_v61  ;;  %409 = vpow2.f32 %v294_v63  ;;  %v279_v2 = vmin.f32 %v266_v0, 0.0  ;;  %v283_v3 = vmin.f32 %v270_v1, 0.0 }
  0xad   :  { %v137_v4 = vpop.f32.mrf.mxu2 }
  0xae   :  { %v404_v5 = vpop.eup %403  ;;  %v159_v53 = vmul.f32 %v602_v37, %v137_v4  ;;  %v300_v9 = vmul.f32 1.442695, %v279_v2  ;;  %v308_v10 = vmul.f32 1.442695, %v283_v3 }
  0xaf   :  { %v406_v6 = vpop.eup %405  ;;  %v318_v7 = vmul.f32 %v404_v5, %v622_v8 }
  0xb0   :  { %v322_v11 = vmul.f32 %v406_v6, %v622_v8  ;;  %v250_v12 = vadd.f32 %v625_v13, %v159_v53  ;;  %411 = vpow2.f32 %v300_v9 }
  0xb1   :  { %331 = vst [vmem:[#allocation5 + $0x38] sm:$0xff] %v318_v7  ;;  %v408_v14 = vpop.eup %407  ;;  %413 = vpow2.f32 %v308_v10 }
  0xb2   :  { %335 = vst [vmem:[#allocation5 + $0x58] sm:$0xff] %v322_v11  ;;  %v267_v15 = vadd.f32 %v608_v42, %v250_v12  ;;  %v410_v16 = vpop.eup %409  ;;  %v313_v17 = vmul.f32 %v408_v14, %v622_v8 }
  0xb3   :  { %v316_v37 = vmul.f32 %v410_v16, %v622_v8 }
  0xb4   :  { %v280_v18 = vmin.f32 %v267_v15, 0.0  ;;  %326 = vst [vmem:[#allocation5 + $0x10] sm:$0xff] %v313_v17 }
  0xb5   :  { %329 = vst [vmem:[#allocation5 + $0x28] sm:$0xff] %v316_v37 }
  0xb6   :  { %v302_v19 = vmul.f32 1.442695, %v280_v18  ;;  %v412_v20 = vpop.eup %411 }
  0xb7   :  { %v414_v21 = vpop.eup %413  ;;  %v319_v13 = vmul.f32 %v412_v20, %v622_v8 }
  0xb8   :  { %415 = vpow2.f32 %v302_v19  ;;  %v323_v22 = vmul.f32 %v414_v21, %v622_v8 }
  0xb9   :  { %332 = vst [vmem:[#allocation5 + $0x40] sm:$0xff] %v319_v13 }
  0xba   :  { %336 = vst [vmem:[#allocation5 + $0x60] sm:$0xff] %v323_v22 }
  0xbe   :  { %v416_v42 = vpop.eup %415 }
  0xbf   :  { %v320_v23 = vmul.f32 %v416_v42, %v622_v8 }
  0xc1   :  { %333 = vst [vmem:[#allocation5 + $0x48] sm:$0xff] %v320_v23 }
  0xc2   :  { %349 = dma.vmem_to_hbm [thread:$0]  %s342_s29, 1664, %s344_s7, [#allocation3], %s460_s8, %s460_s8, %s461_s9  }
  0xc3   :  { %455 = dma.done.wait [#allocation3], 1664  }
  0xc4   :  { %456 = vsyncadd [#allocation3], 4294965632 }
  0xc5   :  { %354 = vsyncpa [#allocation3], 1 }
  0xc6   :  { %355 = vsyncpa [#allocation4], 1 }

</bundles_post_ra>
